<compile_context>
chip_gen: v5e
topology: v5e:2x2
jax: 0.10.0
libtpu: 0.0.40
codegen_flags: <defaults>
</compile_context>

<pallas_src>
import functools

import jax
import jax.numpy as jnp
from jax import lax
from jax.experimental import pallas as pl
from jax.experimental.pallas import tpu as pltpu


def _num_tensorcores():
    """Best-effort TensorCores-per-chip (2 on megacore chips like v7x)."""
    try:
        info = pltpu.get_tpu_info()
        for attr in ("num_cores", "core_count", "num_tensorcores",
                     "tensorcore_count", "cores_per_chip", "num_cores_per_chip"):
            v = getattr(info, attr, None)
            if v:
                return max(1, min(2, int(v)))
    except Exception:
        pass
    try:
        if "v7" in jax.devices()[0].device_kind.lower():
            return 2
    except Exception:
        pass
    return 1  # v5e / v6e: single TensorCore per chip


def _vmem_limit_bytes():
    """Generation-aware scoped-VMEM limit: half of physical, clamped 32..64 MiB
    (v7x: 64 MiB/TC -> 32 MiB; v5e/v6e: 128 MiB -> 64 MiB)."""
    phys = 128 * 1024 * 1024
    try:
        phys = int(pltpu.get_tpu_info().vmem_capacity_bytes)
    except Exception:
        pass
    return int(min(64 * 1024 * 1024, max(32 * 1024 * 1024, phys // 2)))


def _choose_tile_rows(n, c, itemsize, smoothed, vmem_limit):
    """Largest row tile whose double-buffered input tiles *plus* the f32
    temporaries *plus* the lane-padded target buffer fit the VMEM limit."""
    budget = vmem_limit - 6 * 1024 * 1024        # headroom: weight/out blocks, scratch
    n_tmp = 6 if smoothed else 4                 # live f32 (TN,C) temporaries
    per_row = (2 * c * itemsize                  # double-buffered (TN,C) input tiles
               + n_tmp * c * 4                   # f32 intermediates (cast x, e, sm/ce/...)
               + 2 * 128 * 4)                    # (TN,1) i32 target lane-padded to 128
    tn = max(8, budget // per_row)
    tn = min(tn, 4096)
    tn = (tn // 8) * 8
    if n <= tn:
        return n          # whole batch in one block (full dim is always legal)
    return tn


def _focal_pow(base, gamma):
    """(1 - p)^gamma without the exp+log of a general power for small integer
    / half-integer gamma (keeps the single EUP slot free)."""
    g = float(gamma)
    if g == 0.0:
        return jnp.ones_like(base)
    if g == int(g) and 1 <= int(g) <= 8:
        out = base
        for _ in range(int(g) - 1):
            out = out * base
        return out
    if 2.0 * g == int(2.0 * g) and 0.5 <= g <= 8.5:
        out = jnp.sqrt(base)                     # NaN for base < 0, same as power
        for _ in range(int(g - 0.5)):
            out = out * base
        return out
    return jnp.power(base, g)


def _focal_loss_kernel(x_ref, tgt_ref, w_ref, out_ref, *, label_smoothing,
                       gamma, n_rows, tile_rows, tiles_per_split, num_tiles):
    p = pl.program_id(0)   # TensorCore split ("parallel")
    i = pl.program_id(1)   # row-tile index within the split (reduction axis)

    @pl.when(i == 0)
    def _init():
        out_ref[...] = jnp.zeros_like(out_ref)

    tile_idx = p * tiles_per_split + i

    # Skip the heavy body entirely for the (at most one) duplicated tail tile
    # of an uneven split; its DMA re-reads the last valid block via the
    # clamped index_map, but no exp / reductions run.
    @pl.when(tile_idx < num_tiles)
    def _compute():
        x = x_ref[...].astype(jnp.float32)       # (TN, C) logits
        tgt = tgt_ref[...]                       # (TN, 1) int32
        w = w_ref[...].astype(jnp.float32)       # (1, C) per-class weight
        tn, c = x.shape

        cls_ids = lax.broadcasted_iota(jnp.int32, (tn, c), 1)
        is_tgt = cls_ids == tgt                  # (TN, C) bool one-hot mask

        # numerically-stable softmax pieces (single full-width EUP exp)
        x_max = jnp.max(x, axis=1, keepdims=True)
        e = jnp.exp(x - x_max)                   # (TN, C)
        denom = jnp.sum(e, axis=1, keepdims=True)
        inv_denom = 1.0 / denom                  # (TN, 1)

        # weight[target]  ==  masked row reduction (no one-hot multiply)
        w_sel = jnp.sum(jnp.where(is_tgt, w, 0.0), axis=1, keepdims=True)

        if label_smoothing == 0.0:
            # Fast path: clamp(one_hot, 0, 1) == one_hot, so only the target
            # column survives.  Gather the target logit with a masked max and
            # keep exp/log per-row; exact PyTorch semantics (softmax + 1e-7).
            x_t = jnp.max(jnp.where(is_tgt, x, -jnp.inf), axis=1, keepdims=True)
            p_t = jnp.exp(x_t - x_max) * inv_denom + 1e-07
            per_row = _focal_pow(1.0 - p_t, gamma) * (-jnp.log(p_t)) * w_sel
        else:
            # General (label-smoothed) path -- faithful full-width computation.
            # TODO(synk): the cheaper log-softmax rewrite ((x-x_max)-log(denom))
            # drops the +1e-7 inside the log and deviates from PyTorch; kept exact.
            ls_min = label_smoothing / (c - 1)
            ls_max = 1.0 - label_smoothing
            t_smooth = jnp.clip(is_tgt.astype(jnp.float32), ls_min, ls_max)
            sm = e * inv_denom + 1e-07                       # softmax + 1e-7
            ce = -jnp.log(sm) * t_smooth
            per_row = jnp.sum(_focal_pow(1.0 - sm, gamma) * ce,
                              axis=1, keepdims=True) * w_sel

        # Mask rows past the true batch size (tail-tile padding).
        row_ids = tile_idx * tile_rows + lax.broadcasted_iota(jnp.int32, (tn, 1), 0)
        per_row = jnp.where(row_ids < n_rows, per_row, 0.0)

        # Accumulate this tile's partial sum, broadcast over the (8,128)
        # output block so the store stays a full unmasked vector store.
        out_ref[...] += jnp.sum(per_row)


def focal_loss(x, target, weight, *, label_smoothing=0.0, gamma=2.0,
               tile_rows=None):
    """x: (N, C) float (f32 or bf16) logits; target: (N,) int; weight: (C,)."""
    n, c = x.shape
    tgt2d = target.astype(jnp.int32).reshape(n, 1)
    w2d = weight.astype(jnp.float32).reshape(1, c)

    itemsize = jnp.dtype(x.dtype).itemsize
    vmem_limit = _vmem_limit_bytes()
    smoothed = float(label_smoothing) != 0.0
    tn = (_choose_tile_rows(n, c, itemsize, smoothed, vmem_limit)
          if tile_rows is None else int(tile_rows))
    num_tiles = pl.cdiv(n, tn)

    # 2-way split only on megacore chips (v7x) and only with >1 tile; on
    # v5e/v6e (single TC) the split is pure waste (duplicate tile + extra
    # output block), so it collapses to 1.
    splits = _num_tensorcores() if num_tiles > 1 else 1
    splits = max(1, min(splits, num_tiles, 2))
    tiles_per_split = pl.cdiv(num_tiles, splits)

    def row_block(p, i):
        # Clamp so a duplicated out-of-range tile re-reads the last valid
        # block; the kernel gates its compute off with pl.when.
        t = jnp.minimum(p * tiles_per_split + i, num_tiles - 1)
        return (t, 0)

    kernel = functools.partial(
        _focal_loss_kernel,
        label_smoothing=float(label_smoothing),
        gamma=float(gamma),
        n_rows=n,
        tile_rows=tn,
        tiles_per_split=tiles_per_split,
        num_tiles=num_tiles,
    )

    # Path-dependent advisory cost (weight read counted once, not per step).
    if smoothed:
        flops, trans = 16 * n * c, 2 * n * c + n
    else:
        flops, trans = 9 * n * c, n * c + 3 * n
    cost = pl.CostEstimate(
        flops=flops,
        transcendentals=trans,
        bytes_accessed=itemsize * n * c + 4 * n + 4 * c + 4 * splits * 8 * 128,
    )

    partials = pl.pallas_call(
        kernel,
        out_shape=jax.ShapeDtypeStruct((splits * 8, 128), jnp.float32),
        grid=(splits, tiles_per_split),
        in_specs=[
            pl.BlockSpec((tn, c), row_block),
            pl.BlockSpec((tn, 1), row_block),
            pl.BlockSpec((1, c), lambda p, i: (0, 0)),
        ],
        out_specs=pl.BlockSpec((8, 128), lambda p, i: (p, 0)),
        compiler_params=pltpu.CompilerParams(
            dimension_semantics=("parallel", "arbitrary"),
            vmem_limit_bytes=vmem_limit,
        ),
        cost_estimate=cost,
    )(x, tgt2d, w2d)

    # Each split's partial sum is replicated over its (8, 128) block.
    return jnp.sum(partials[::8, 0]) / n


def focal_loss_ref(x, target, weight, *, label_smoothing=0.0, gamma=2.0):
    """Pure-JAX reference mirroring the PyTorch forward."""
    n, c = x.shape
    onehot = jax.nn.one_hot(target, c, dtype=jnp.float32)
    t_smooth = jnp.clip(onehot, label_smoothing / (c - 1), 1.0 - label_smoothing)
    sm = jax.nn.softmax(x.astype(jnp.float32), axis=1) + 1e-07
    ce = -jnp.log(sm) * t_smooth
    fl = jnp.power(1.0 - sm, gamma) * ce
    fl = jnp.sum(fl, axis=1) * weight[target]
    return jnp.mean(fl)


if __name__ == "__main__":
    key = jax.random.PRNGKey(0)
    kx, kt = jax.random.split(key)

    N, C = 8, 32  # small batch of logits over 32 classes
    x = jax.random.normal(kx, (N, C), dtype=jnp.float32)
    target = jax.random.randint(kt, (N,), 0, C, dtype=jnp.int32)
    # Deterministic per-class weights (module's __init__ takes `weight`).
    weight = 0.5 + 0.05 * jnp.arange(C, dtype=jnp.float32)

    # label_smoothing == 0 fast path (single-block grid for small N, C)
    loss = jax.block_until_ready(focal_loss(x, target, weight,
                                            label_smoothing=0.0, gamma=2.0))
    ref = focal_loss_ref(x, target, weight, label_smoothing=0.0, gamma=2.0)
    assert jnp.allclose(loss, ref, rtol=1e-5, atol=1e-6), (loss, ref)

    # label_smoothing > 0 general path
    loss_ls = jax.block_until_ready(focal_loss(x, target, weight,
                                               label_smoothing=0.1, gamma=2.0))
    ref_ls = focal_loss_ref(x, target, weight, label_smoothing=0.1, gamma=2.0)
    assert jnp.allclose(loss_ls, ref_ls, rtol=1e-5, atol=1e-6), (loss_ls, ref_ls)

    # multi-tile + tail-masking (+ gated duplicate tile on megacore chips)
    N2 = 20
    kx2, kt2 = jax.random.split(jax.random.PRNGKey(1))
    x2 = jax.random.normal(kx2, (N2, C), dtype=jnp.float32)
    t2 = jax.random.randint(kt2, (N2,), 0, C, dtype=jnp.int32)
    loss2 = jax.block_until_ready(focal_loss(x2, t2, weight, tile_rows=8))
    ref2 = focal_loss_ref(x2, t2, weight)
    assert jnp.allclose(loss2, ref2, rtol=1e-5, atol=1e-6), (loss2, ref2)

    # bf16 input (dtype-aware tiling path); math still f32 inside the kernel
    x_bf16 = x2.astype(jnp.bfloat16)
    loss_bf = jax.block_until_ready(focal_loss(x_bf16, t2, weight,
                                               label_smoothing=0.1, gamma=2.0))
    ref_bf = focal_loss_ref(x_bf16, t2, weight, label_smoothing=0.1, gamma=2.0)
    assert jnp.allclose(loss_bf, ref_bf, rtol=1e-4, atol=1e-5), (loss_bf, ref_bf)

    # half-integer gamma (sqrt + multiply fast power)
    loss_g = jax.block_until_ready(focal_loss(x, target, weight, gamma=1.5))
    ref_g = focal_loss_ref(x, target, weight, gamma=1.5)
    assert jnp.allclose(loss_g, ref_g, rtol=1e-5, atol=1e-6), (loss_g, ref_g)

    print("KERNEL_OK")
</pallas_src>

<mosaic_0001>
module attributes {stable_mosaic.version = 11 : i64} {
  func.func @_focal_loss_kernel(%arg0: i32, %arg1: i32, %arg2: memref<8x32xf32, #tpu.memory_space<vmem>>, %arg3: memref<8x1xi32, #tpu.memory_space<vmem>>, %arg4: memref<1x32xf32, #tpu.memory_space<vmem>>, %arg5: memref<8x128xf32, #tpu.memory_space<vmem>>) attributes {dimension_semantics = [#tpu.dimension_semantics<parallel>, #tpu.dimension_semantics<arbitrary>], iteration_bounds = array<i64: 1, 1>, scalar_prefetch = 0 : i64, scratch_operands = 0 : i64, tpu.core_type = #tpu.core_type<tc>, window_params = [{transform_indices = @transform_0, window_bounds = array<i64: 8, 32>}, {transform_indices = @transform_1, window_bounds = array<i64: 8, 1>}, {pipeline_mode = #tpu.pipeline_mode<synchronous>, transform_indices = @transform_2, window_bounds = array<i64: 1, 32>}, {transform_indices = @transform_3, window_bounds = array<i64: 8, 128>}]} {
    %c0_i32 = arith.constant 0 : i32
    %0 = arith.cmpi eq, %arg1, %c0_i32 : i32
    %1 = arith.extui %0 : i1 to i32
    %c0_i32_0 = arith.constant 0 : i32
    %2 = arith.cmpi ne, %1, %c0_i32_0 : i32
    scf.if %2 {
      %cst = arith.constant 0.000000e+00 : f32
      %8 = vector.broadcast %cst : f32 to vector<8x128xf32>
      %c0 = arith.constant 0 : index
      %c0_3 = arith.constant 0 : index
      %9 = vector.load %arg5[%c0, %c0_3] : memref<8x128xf32, #tpu.memory_space<vmem>>, vector<8x128xf32>
      tpu.vector_store %arg5[%c0, %c0_3], %8 {strides = array<i32>} : memref<8x128xf32, #tpu.memory_space<vmem>>, vector<8x128xf32>,
    } else {
    }
    %c1_i32 = arith.constant 1 : i32
    %3 = arith.muli %arg0, %c1_i32 : i32
    %4 = arith.addi %3, %arg1 : i32
    %c1_i32_1 = arith.constant 1 : i32
    %5 = arith.cmpi slt, %4, %c1_i32_1 : i32
    %6 = arith.extui %5 : i1 to i32
    %c0_i32_2 = arith.constant 0 : i32
    %7 = arith.cmpi ne, %6, %c0_i32_2 : i32
    scf.if %7 {
      %c0 = arith.constant 0 : index
      %c0_3 = arith.constant 0 : index
      %8 = vector.load %arg2[%c0, %c0_3] : memref<8x32xf32, #tpu.memory_space<vmem>>, vector<8x32xf32>
      %c0_4 = arith.constant 0 : index
      %c0_5 = arith.constant 0 : index
      %9 = vector.load %arg3[%c0_4, %c0_5] : memref<8x1xi32, #tpu.memory_space<vmem>>, vector<8x1xi32>
      %c0_6 = arith.constant 0 : index
      %c0_7 = arith.constant 0 : index
      %10 = vector.load %arg4[%c0_6, %c0_7] : memref<1x32xf32, #tpu.memory_space<vmem>>, vector<1x32xf32>
      %11 = tpu.iota {dimensions = array<i32: 1>} : vector<8x32xi32>
      %12 = vector.broadcast %9 : vector<8x1xi32> to vector<8x32xi32>
      %13 = arith.cmpi eq, %11, %12 : vector<8x32xi32>
      %cst = arith.constant dense<0xFF800000> : vector<8xf32>
      %14 = vector.multi_reduction <maximumf>, %8, %cst [1] : vector<8x32xf32> to vector<8xf32>
      %15 = vector.shape_cast %14 : vector<8xf32> to vector<8x1xf32>
      %16 = vector.broadcast %15 : vector<8x1xf32> to vector<8x32xf32>
      %17 = arith.subf %8, %16 : vector<8x32xf32>
      %18 = math.exp %17 : vector<8x32xf32>
      %cst_8 = arith.constant dense<0.000000e+00> : vector<8xf32>
      %19 = vector.multi_reduction <add>, %18, %cst_8 [1] : vector<8x32xf32> to vector<8xf32>
      %20 = vector.shape_cast %19 : vector<8xf32> to vector<8x1xf32>
      %cst_9 = arith.constant 1.000000e+00 : f32
      %21 = vector.broadcast %cst_9 : f32 to vector<8x1xf32>
      %22 = arith.divf %21, %20 : vector<8x1xf32>
      %cst_10 = arith.constant 0.000000e+00 : f32
      %23 = vector.shape_cast %10 : vector<1x32xf32> to vector<1x32xf32>
      %24 = vector.broadcast %23 : vector<1x32xf32> to vector<8x32xf32>
      %25 = vector.broadcast %cst_10 : f32 to vector<8x32xf32>
      %26 = arith.select %13, %24, %25 : vector<8x32xi1>, vector<8x32xf32>
      %cst_11 = arith.constant dense<0.000000e+00> : vector<8xf32>
      %27 = vector.multi_reduction <add>, %26, %cst_11 [1] : vector<8x32xf32> to vector<8xf32>
      %28 = vector.shape_cast %27 : vector<8xf32> to vector<8x1xf32>
      %cst_12 = arith.constant 0xFF800000 : f32
      %29 = vector.broadcast %cst_12 : f32 to vector<8x32xf32>
      %30 = arith.select %13, %8, %29 : vector<8x32xi1>, vector<8x32xf32>
      %cst_13 = arith.constant dense<0xFF800000> : vector<8xf32>
      %31 = vector.multi_reduction <maximumf>, %30, %cst_13 [1] : vector<8x32xf32> to vector<8xf32>
      %32 = vector.shape_cast %31 : vector<8xf32> to vector<8x1xf32>
      %33 = arith.subf %32, %15 : vector<8x1xf32>
      %34 = math.exp %33 : vector<8x1xf32>
      %35 = arith.mulf %34, %22 : vector<8x1xf32>
      %cst_14 = arith.constant 1.000000e-07 : f32
      %36 = vector.broadcast %cst_14 : f32 to vector<8x1xf32>
      %37 = arith.addf %35, %36 : vector<8x1xf32>
      %cst_15 = arith.constant 1.000000e+00 : f32
      %38 = vector.broadcast %cst_15 : f32 to vector<8x1xf32>
      %39 = arith.subf %38, %37 : vector<8x1xf32>
      %40 = arith.mulf %39, %39 : vector<8x1xf32>
      %41 = math.log %37 : vector<8x1xf32>
      %cst_16 = arith.constant 0.000000e+00 : f32
      %42 = vector.broadcast %cst_16 : f32 to vector<8x1xf32>
      %43 = arith.subf %42, %41 : vector<8x1xf32>
      %44 = arith.mulf %40, %43 : vector<8x1xf32>
      %45 = arith.mulf %44, %28 : vector<8x1xf32>
      %c8_i32 = arith.constant 8 : i32
      %46 = arith.muli %4, %c8_i32 : i32
      %47 = tpu.iota {dimensions = array<i32: 0>} : vector<8x1xi32>
      %48 = vector.broadcast %46 : i32 to vector<8x1xi32>
      %49 = arith.addi %48, %47 : vector<8x1xi32>
      %c8_i32_17 = arith.constant 8 : i32
      %50 = vector.broadcast %c8_i32_17 : i32 to vector<8x1xi32>
      %51 = arith.cmpi slt, %49, %50 : vector<8x1xi32>
      %cst_18 = arith.constant 0.000000e+00 : f32
      %52 = vector.broadcast %cst_18 : f32 to vector<8x1xf32>
      %53 = arith.select %51, %45, %52 : vector<8x1xi1>, vector<8x1xf32>
      %c0_19 = arith.constant 0 : index
      %c0_20 = arith.constant 0 : index
      %54 = vector.load %arg5[%c0_19, %c0_20] : memref<8x128xf32, #tpu.memory_space<vmem>>, vector<8x128xf32>
      %55 = vector.shape_cast %53 : vector<8x1xf32> to vector<1x8x1xf32>
      %cst_21 = arith.constant dense<0.000000e+00> : vector<1xf32>
      %56 = vector.multi_reduction <add>, %55, %cst_21 [1, 2] : vector<1x8x1xf32> to vector<1xf32>
      %57 = vector.shape_cast %56 : vector<1xf32> to vector<1x1x1xf32>
      %58 = vector.extract %57[0, 0, 0] : f32 from vector<1x1x1xf32>
      %59 = vector.broadcast %58 : f32 to vector<8x128xf32>
      %60 = arith.addf %54, %59 : vector<8x128xf32>
      %c0_22 = arith.constant 0 : index
      %c0_23 = arith.constant 0 : index
      %61 = vector.load %arg5[%c0_22, %c0_23] : memref<8x128xf32, #tpu.memory_space<vmem>>, vector<8x128xf32>
      tpu.vector_store %arg5[%c0_22, %c0_23], %60 {strides = array<i32>} : memref<8x128xf32, #tpu.memory_space<vmem>>, vector<8x128xf32>,
    } else {
    }
    return
  }
  func.func @transform_0(%arg0: i32, %arg1: i32) -> (i32, i32) {
    %c1_i32 = arith.constant 1 : i32
    %0 = arith.muli %arg0, %c1_i32 : i32
    %1 = arith.addi %0, %arg1 : i32
    %c0_i32 = arith.constant 0 : i32
    %2 = arith.minsi %1, %c0_i32 : i32
    %c0_i32_0 = arith.constant 0 : i32
    %c0_i32_1 = arith.constant 0 : i32
    return %2, %c0_i32_0 : i32, i32
  }
  func.func @transform_1(%arg0: i32, %arg1: i32) -> (i32, i32) {
    %c1_i32 = arith.constant 1 : i32
    %0 = arith.muli %arg0, %c1_i32 : i32
    %1 = arith.addi %0, %arg1 : i32
    %c0_i32 = arith.constant 0 : i32
    %2 = arith.minsi %1, %c0_i32 : i32
    %c0_i32_0 = arith.constant 0 : i32
    %c0_i32_1 = arith.constant 0 : i32
    return %2, %c0_i32_0 : i32, i32
  }
  func.func @transform_2(%arg0: i32, %arg1: i32) -> (i32, i32) {
    %c0_i32 = arith.constant 0 : i32
    %c0_i32_0 = arith.constant 0 : i32
    %c0_i32_1 = arith.constant 0 : i32
    return %c0_i32, %c0_i32_0 : i32, i32
  }
  func.func @transform_3(%arg0: i32, %arg1: i32) -> (i32, i32) {
    %c0_i32 = arith.constant 0 : i32
    %c0_i32_0 = arith.constant 0 : i32
    return %arg0, %c0_i32 : i32, i32
  }
}

</mosaic_0001>

<bundles_post_ra>
// kernel: tpu_custom_call.1
= control target key start
LH: loop header
LB: loop body
LE: loop exit
PB: predicated region body
PF: predicated region fallthrough
CT: control target
= control target key end

     0   :  { %vm88_vm0 = vcmask 261120   ;;  %v227_v2 = vmov 0   ;;  %s265_s0 = inlined_call_operand.vmem [shape: f32[8,32], index: 0, kind: input, shape index: {}]   ;;  %s266_s1 = inlined_call_operand.vmem [shape: s32[8,1], index: 1, kind: input, shape index: {}]   ;;  %s267_s2 = inlined_call_operand.vmem [shape: f32[1,32], index: 2, kind: input, shape index: {}]   ;;  %s268_s3 = inlined_call_operand.hbm [shape: f32[8,128], index: 3, kind: output, shape index: {}]  }
   0x1   :  { %v79_v0 = vld [vmem:[%s265_s0] sm:$0xff]  ;;  %191 = vset.pattern.permute.xlu0 %v227_v2 }
   0x2   :  { %v89_v1 = vsel %vm88_vm0, %v79_v0, -inf }
   0x3   :  { %8 = vsyncpa [#allocation3], 0  ;;  %90 = vmax.xlane.f32.xlu0 %v89_v1  ;;  %v80_v3 = vld [vmem:[%s266_s1] sm:$0xff]  ;;  %v82_v9 = vlaneseq  ;;  %vm144_vm6 = vcmask 7168   ;;  %s228_s1 = smov [#allocation2]   ;;  %s165_s19 = sshll.u32 %s268_s3, 4  ;;  %s166_s19 = int_to_ptr.hbm [resolvable:$true] %s165_s19 }
   0x4   :  { %v192_v11 = vld [vmem:[%s267_s2] ss:$0 sm:$0xff]  ;;  %s163_s2 = sshll.u32 %s228_s1, 4  ;;  %s164_s2 = int_to_ptr.vmem [resolvable:$true] %s163_s2 }
   0x5   :  { %v83_v10 = vand.u32 127, %v82_v9 }
  0x17   :  { %85 = vperm.xlu0 %191, %v80_v3  }
  0x76   :  { %v91_v4 = vpop.xlane.xlu0 %90 }
  0x77   :  { %v92_v5 = vsub.f32 %v79_v0, %v91_v4 }
  0x79   :  { %v93_v6 = vmul.f32 1.442695, %v92_v5 }
  0x7b   :  { %193 = vpow2.f32 %v93_v6 }
  0x81   :  { %v194_v7 = vpop.eup %193 }
  0x82   :  { %v95_v8 = vsel %vm88_vm0, %v194_v7, 0.0 }
  0x83   :  { %96 = vadd.xlane.f32.xlu1 %v95_v8 }
  0x89   :  { %v86_v12 = vpop.permute.xlu0 %85 }
  0x8a   :  { %vm87_vm1 = vcmp.eq.s32.totalorder %v83_v10, %v86_v12 }
  0x8b   :  { %v120_v13 = vsel %vm87_vm1, %v79_v0, -inf  ;;  %v116_v14 = vsel %vm87_vm1, %v192_v11, 0.0 }
  0x8c   :  { %v121_v15 = vsel %vm88_vm0, %v120_v13, -inf  ;;  %v117_v16 = vsel %vm88_vm0, %v116_v14, 0.0 }
  0x8d   :  { %122 = vmax.xlane.f32.xlu1 %v121_v15  ;;  %118 = vadd.xlane.f32.xlu2 %v117_v16 }
  0xf6   :  { %v97_v17 = vpop.xlane.xlu1 %96 }
  0xf7   :  { %195 = vrcp.f32 %v97_v17  ;;  %v109_v26 = vand.u32 2147483648, %v97_v17  ;;  %vm103_vm3 = vweird.f32 %v97_v17  ;;  %v107_v27 = vand.u32 2147483647, %v97_v17 }
  0xf9   :  { %v110_v29 = vor.u32 1.1754944e-38, %v109_v26  ;;  %vm108_vm5 = vcmp.eq.f32.partialorder %v107_v27, 8.507059e+37 }
  0xfd   :  { %v196_v18 = vpop.eup %195 }
  0xfe   :  { %v99_v19 = vmul.f32 %v196_v18, %v97_v17  ;;  %vm104_vm2 = vweird.f32 %v196_v18 }
  0xff   :  { %vm105_vm4 = vmor %vm103_vm3, %vm104_vm2 }
 0x100   :  { %v100_v20 = vsub.f32 1.0, %v99_v19  ;;  %v123_v21 = vpop.xlane.xlu1 %122  ;;  %v119_v40 = vpop.xlane.xlu2 %118 }
 0x101   :  { %v124_v22 = vsub.f32 %v123_v21, %v91_v4 }
 0x102   :  { %v101_v23 = vmul.f32 %v196_v18, %v100_v20 }
 0x103   :  { %v125_v24 = vmul.f32 1.442695, %v124_v22 }
 0x104   :  { %v102_v25 = vadd.f32 %v196_v18, %v101_v23 }
 0x105   :  { %197 = vpow2.f32 %v125_v24 }
 0x106   :  { %v106_v28 = vsel %vm105_vm4, %v196_v18, %v102_v25 }
 0x107   :  { %v111_v31 = vsel %vm108_vm5, %v110_v29, %v106_v28 }
 0x10b   :  { %v198_v30 = vpop.eup %197 }
 0x10c   :  { %v127_v32 = vmul.f32 %v198_v30, %v111_v31 }
 0x10e   :  { %v128_v33 = vadd.f32 1e-07, %v127_v32 }
 0x110   :  { %199 = vlog2.f32 %v128_v33  ;;  %v129_v34 = vsub.f32 1.0, %v128_v33 }
 0x112   :  { %v130_v37 = vmul.f32 %v129_v34, %v129_v34 }
 0x116   :  { %v200_v35 = vpop.eup %199 }
 0x117   :  { %v132_v36 = vmul.f32 0.6931472, %v200_v35 }
 0x119   :  { %v133_v38 = vsub.f32 0.0, %v132_v36 }
 0x11b   :  { %v134_v39 = vmul.f32 %v133_v38, %v130_v37 }
 0x11d   :  { %v135_v41 = vmul.f32 %v134_v39, %v119_v40 }
 0x11f   :  { %v145_v42 = vsel %vm144_vm6, %v135_v41, 0.0 }
 0x120   :  { %146 = vadd.xlane.f32.xlu2 %v145_v42 }
 0x193   :  { %v147_v43 = vpop.xlane.xlu2 %146 }
 0x194   :  { %v148_v44 = vrot.slane %v147_v43, 4 }
 0x196   :  { %v149_v45 = vadd.f32 %v148_v44, %v147_v43 }
 0x198   :  { %v150_v46 = vrot.slane %v149_v45, 2 }
 0x19a   :  { %v151_v47 = vadd.f32 %v150_v46, %v149_v45 }
 0x19c   :  { %v152_v48 = vrot.slane %v151_v47, 1 }
 0x19e   :  { %v153_v49 = vadd.f32 %v152_v48, %v151_v47 }
 0x1a0   :  { %186 = vpush %v153_v49 }
 0x1d1   :  { %s187_s20 = spop %186 }
 0x1d2   :  { %v155_v50 = vstv %s187_s20 }
 0x1d3   :  { %157 = vst [vmem:[#allocation2] sm:$0xff] %v155_v50 }
 0x1d4   :  { %168 = dma.vmem_to_hbm [thread:$0]  %s164_s2, 128, %s166_s19, [#allocation3]  }
 0x1d5   :  { %225 = dma.done.wait [#allocation3], 128  }
 0x1d6   :  { %226 = vsyncadd [#allocation3], 4294967168 }
 0x1d7   :  { %173 = vsyncpa [#allocation3], 1 }

</bundles_post_ra>
